<compile_context>
chip_gen: v5e
topology: v5e:2x2
jax: 0.10.0
libtpu: 0.0.40
codegen_flags: <defaults>
</compile_context>

<pallas_src>
import functools
import math

import jax
import jax.numpy as jnp
from jax.experimental import pallas as pl
from jax.experimental.pallas import tpu as pltpu


_LANE = 128      # lane (minor) tile width
_SUBLANE = 8     # sublane tile width


def _round_up(n, m):
    return ((n + m - 1) // m) * m


# ---------------------------------------------------------------------------
# Pallas kernel: the whole CNN forward for one batch tile.
# ---------------------------------------------------------------------------
def _fused_cnn_kernel(*refs, num_layers):
    """refs = (x, M_0, b_0, ..., M_{L-1}, b_{L-1}, mask, out).

    Hidden layers: h <- relu(h @ M_l + b_l)   (bf16 operands, f32 accumulation)
    Final layer:   y <- softplus(h @ M_f + b_f) * (mask != 0)
    Everything stays in VMEM / vregs between layers (no inter-layer HBM traffic).
    """
    x_ref = refs[0]
    layer_refs = refs[1:1 + 2 * num_layers]
    mask_ref = refs[1 + 2 * num_layers]
    o_ref = refs[2 + 2 * num_layers]

    h = x_ref[...]                                            # [TB, D0] bf16
    for l in range(num_layers - 1):                           # static unroll
        w = layer_refs[2 * l][...]                            # bf16 [Din, Dout]
        b = layer_refs[2 * l + 1][...]                        # f32  [1, Dout]
        z = jnp.dot(h, w, preferred_element_type=jnp.float32) + b
        h = jnp.maximum(z, 0.0).astype(jnp.bfloat16)          # ReLU -> bf16 MXU feed

    w = layer_refs[2 * (num_layers - 1)][...]
    b = layer_refs[2 * (num_layers - 1) + 1][...]
    y = jnp.dot(h, w, preferred_element_type=jnp.float32) + b
    # numerically stable softplus: max(y, 0) + log1p(exp(-|y|))  (f32 epilogue)
    y = jnp.maximum(y, 0.0) + jnp.log1p(jnp.exp(-jnp.abs(y)))
    y = jnp.where(mask_ref[...] != 0, y, 0.0)                 # passive-rates gate
    o_ref[...] = y.astype(o_ref.dtype)


# ---------------------------------------------------------------------------
# One-time weight folding (hoisted out of the hot path).
# ---------------------------------------------------------------------------
def _shift_indicators(H, W, K):
    """P[t, s_src, s_dst] = 1 iff circular-conv tap t = ky*K + kx reads output
    site s_dst = h*W + w from input site s_src = ((h+ky-p)%H)*W + (w+kx-p)%W."""
    p = (K - 1) // 2
    hh, ww = jnp.meshgrid(jnp.arange(H), jnp.arange(W), indexing="ij")
    src_all = []
    for ky in range(K):
        for kx in range(K):
            sh = (hh + ky - p) % H
            sw = (ww + kx - p) % W
            src_all.append((sh * W + sw).reshape(-1))          # [HW], dst-indexed
    src = jnp.stack(src_all)                                   # [KK, HW]
    eye = jnp.arange(H * W)
    return (eye[None, :, None] == src[:, None, :]).astype(jnp.float32)  # [KK,HW,HW]


def _fold_conv(weight, bias, P, din_pad, dout_pad, weight_dtype):
    """Fold a circular Conv2d (weight [Cout,Cin,K,K], bias [Cout]) into a dense
    matrix [Cin*HW -> Cout*HW], zero-padded to lane-friendly [din_pad, dout_pad]
    and stored in `weight_dtype`, plus a broadcast f32 bias row [1, dout_pad]."""
    Cout, Cin, K, _ = weight.shape
    KK, HW, _ = P.shape
    wk = weight.reshape(Cout, Cin, KK).astype(jnp.float32)
    m = jnp.einsum("oct,tps->cpos", wk, P).reshape(Cin * HW, Cout * HW)
    m = jnp.pad(m, ((0, din_pad - Cin * HW), (0, dout_pad - Cout * HW)))
    m = m.astype(weight_dtype)
    b = jnp.repeat(bias.astype(jnp.float32), HW)
    b = jnp.pad(b, (0, dout_pad - Cout * HW)).reshape(1, dout_pad)
    return m, b


def fold_periodic_cnn_params(params, lattice_size, *, weight_dtype=jnp.bfloat16):
    """Fold every circular conv into a dense lane-padded matrix. Call ONCE per
    parameter set and pass the result into periodic_cnn_forward."""
    H = W = lattice_size
    HW = H * W
    w0, b0 = params["initial"]
    wf, bf = params["final"]
    K = w0.shape[-1]
    Ch = w0.shape[0]
    Cout = wf.shape[0]

    P = _shift_indicators(H, W, K)
    din0 = _round_up(HW, _LANE)              # padded input width  (Cin = 1)
    dh = _round_up(Ch * HW, _LANE)           # padded hidden width
    dout = _round_up(Cout * HW, _LANE)       # padded output width

    layers = [_fold_conv(w0, b0, P, din0, dh, weight_dtype)]
    for wi, bi in params["inner"]:
        layers.append(_fold_conv(wi, bi, P, dh, dh, weight_dtype))
    layers.append(_fold_conv(wf, bf, P, dh, dout, weight_dtype))
    return layers                            # list of (M_padded, bias_row)


# ---------------------------------------------------------------------------
# Generation-aware VMEM limit.
# ---------------------------------------------------------------------------
def _vmem_limit_bytes():
    cap = 64 * 1024 * 1024                   # conservative fallback (v7x per-TC)
    try:
        cap = int(getattr(pltpu.get_tpu_info(), "vmem_capacity_bytes", cap))
    except Exception:
        pass
    # ~3/4 of physical: 96 MiB on v5e/v6e (128 MiB), 48 MiB on v7x (64 MiB).
    return min((cap * 3) // 4, 112 * 1024 * 1024)


# ---------------------------------------------------------------------------
# Public forward: state [B, L, L]  ->  out [B, out_channels, L, L]  (>= 0)
# ---------------------------------------------------------------------------
def periodic_cnn_forward(state, folded_layers, passive_rates_fn, *,
                         batch_tile=512, out_dtype=jnp.float32):
    B, H, W = state.shape
    HW = H * W

    layers = folded_layers
    num_layers = len(layers)
    din0 = layers[0][0].shape[0]
    dh = layers[0][0].shape[1]
    dout = layers[-1][0].shape[1]

    # Passive-rates gate, streamed as int8 (1 byte instead of 4 per element).
    rates = passive_rates_fn(state)                              # [B, Cout, H, W]
    Cout = rates.shape[1]
    mask = (rates > 0.0).reshape(B, Cout * HW).astype(jnp.int8)

    # Batch tiling: no ragged tail (pad batch to a multiple of TB); when the
    # whole batch fits a single tile, split into ~2 tiles so both v7x
    # TensorCores get a grid step.
    Bp = _round_up(B, _SUBLANE)
    if Bp > batch_tile:
        TB = batch_tile
    else:
        TB = max(_SUBLANE, _round_up(pl.cdiv(Bp, 2), _SUBLANE))
    Bp = _round_up(Bp, TB)
    grid = (Bp // TB,)

    # Flattened, lane/sublane-padded activations (channel-major: c*HW + site).
    x = state.reshape(B, HW).astype(jnp.bfloat16)
    x = jnp.pad(x, ((0, Bp - B), (0, din0 - HW)))
    mask = jnp.pad(mask, ((0, Bp - B), (0, dout - Cout * HW)))

    inputs = [x]
    in_specs = [pl.BlockSpec((TB, din0), lambda i: (i, 0))]
    for (m, b) in layers:
        inputs += [m, b]
        # constant index_map -> fetched once, VMEM-resident; Buffered(1) since a
        # second buffer for a never-changing block is pure VMEM waste.
        in_specs += [
            pl.BlockSpec(m.shape, lambda i: (0, 0), pipeline_mode=pl.Buffered(1)),
            pl.BlockSpec(b.shape, lambda i: (0, 0), pipeline_mode=pl.Buffered(1)),
        ]
    inputs.append(mask)
    in_specs.append(pl.BlockSpec((TB, dout), lambda i: (i, 0)))

    flops = 2 * Bp * (din0 * dh + (num_layers - 2) * dh * dh + dh * dout)
    bytes_accessed = (sum(int(a.size) * a.dtype.itemsize for a in inputs)
                      + Bp * dout * jnp.dtype(out_dtype).itemsize)
    cost = pl.CostEstimate(flops=int(flops),
                           transcendentals=int(2 * Bp * dout),
                           bytes_accessed=int(bytes_accessed))

    out = pl.pallas_call(
        functools.partial(_fused_cnn_kernel, num_layers=num_layers),
        grid=grid,
        in_specs=in_specs,
        out_specs=pl.BlockSpec((TB, dout), lambda i: (i, 0)),
        out_shape=jax.ShapeDtypeStruct((Bp, dout), out_dtype),
        compiler_params=pltpu.CompilerParams(
            dimension_semantics=("parallel",),          # batch -> megacore shard
            vmem_limit_bytes=_vmem_limit_bytes()),
        cost_estimate=cost,
    )(*inputs)

    return out[:B, :Cout * HW].reshape(B, Cout, H, W)


# ---------------------------------------------------------------------------
# Parameter init (PyTorch Conv2d default: U(-1/sqrt(fan_in), 1/sqrt(fan_in)))
# ---------------------------------------------------------------------------
def init_periodic_cnn_params(key, *, hidden_channels, out_channels,
                             kernel_size, num_inner_layers):
    def conv_init(k, cout, cin, ks):
        kw, kb = jax.random.split(k)
        fan_in = cin * ks * ks
        bound = 1.0 / math.sqrt(fan_in)
        w = jax.random.uniform(kw, (cout, cin, ks, ks), jnp.float32, -bound, bound)
        b = jax.random.uniform(kb, (cout,), jnp.float32, -bound, bound)
        return w, b

    keys = jax.random.split(key, num_inner_layers + 2)
    return {
        "initial": conv_init(keys[0], hidden_channels, 1, kernel_size),
        "inner": [conv_init(keys[1 + i], hidden_channels, hidden_channels,
                            kernel_size) for i in range(num_inner_layers)],
        "final": conv_init(keys[-1], out_channels, hidden_channels, kernel_size),
    }


# ---------------------------------------------------------------------------
# Pure-JAX reference (circular pad + conv) for a correctness spot-check.
# ---------------------------------------------------------------------------
def _ref_forward(state, params, passive_rates_fn):
    def conv(x, w, b):
        p = (w.shape[-1] - 1) // 2
        xp = jnp.pad(x, ((0, 0), (0, 0), (p, p), (p, p)), mode="wrap")
        y = jax.lax.conv_general_dilated(
            xp, w, (1, 1), "VALID",
            dimension_numbers=("NCHW", "OIHW", "NCHW"),
            precision=jax.lax.Precision.HIGHEST)
        return y + b[None, :, None, None]

    x = state[:, None, :, :].astype(jnp.float32)
    h = jax.nn.relu(conv(x, *params["initial"]))
    for wi, bi in params["inner"]:
        h = jax.nn.relu(conv(h, wi, bi))
    y = jax.nn.softplus(conv(h, *params["final"]))
    return y * (passive_rates_fn(state) > 0.0)


if __name__ == "__main__":
    # hparams consistent with the module's constraint:
    #   (lattice_size - 1) % (kernel_size - 1) == 0 and kernel_size odd
    batch = 2
    lattice_size = 5
    kernel_size = 3
    hidden_channels = 8
    potential = "ising"
    out_channels = 1 if potential.startswith("ising") else 2
    assert (lattice_size - 1) % (kernel_size - 1) == 0 and kernel_size % 2 == 1
    num_inner_layers = (lattice_size - 1) // (kernel_size - 1)   # = 2

    key = jax.random.PRNGKey(0)
    kparams, kstate = jax.random.split(key)
    params = init_periodic_cnn_params(
        kparams,
        hidden_channels=hidden_channels,
        out_channels=out_channels,
        kernel_size=kernel_size,
        num_inner_layers=num_inner_layers,
    )

    # Deterministic stand-in for the externally injected passive_rates_fn:
    # rate for site (h, w) carries the sign of the spin at (h, w).
    def passive_rates_fn(s):
        return jnp.broadcast_to(
            s[:, None, :, :],
            (s.shape[0], out_channels, s.shape[1], s.shape[2]))

    state = jax.random.normal(kstate, (batch, lattice_size, lattice_size),
                              jnp.float32)

    # One-time fold (hoisted out of the jitted hot path).
    folded = fold_periodic_cnn_params(params, lattice_size)

    fwd = jax.jit(lambda s, layers: periodic_cnn_forward(s, layers,
                                                         passive_rates_fn))
    out = jax.block_until_ready(fwd(state, folded))

    ref = _ref_forward(state, params, passive_rates_fn)

    assert out.shape == (batch, out_channels, lattice_size, lattice_size)
    assert bool(jnp.all(out >= 0.0))
    assert bool(jnp.allclose(out, ref, rtol=2e-2, atol=2e-2)), (
        float(jnp.max(jnp.abs(out - ref))))
    print("KERNEL_OK")
</pallas_src>

<mosaic_0001>
module attributes {stable_mosaic.version = 11 : i64} {
  func.func @_fused_cnn_kernel(%arg0: i32, %arg1: memref<8x128xbf16, #tpu.memory_space<vmem>>, %arg2: memref<128x256xbf16, #tpu.memory_space<vmem>>, %arg3: memref<1x256xf32, #tpu.memory_space<vmem>>, %arg4: memref<256x256xbf16, #tpu.memory_space<vmem>>, %arg5: memref<1x256xf32, #tpu.memory_space<vmem>>, %arg6: memref<256x256xbf16, #tpu.memory_space<vmem>>, %arg7: memref<1x256xf32, #tpu.memory_space<vmem>>, %arg8: memref<256x128xbf16, #tpu.memory_space<vmem>>, %arg9: memref<1x128xf32, #tpu.memory_space<vmem>>, %arg10: memref<8x128xi8, #tpu.memory_space<vmem>>, %arg11: memref<8x128xf32, #tpu.memory_space<vmem>>) attributes {dimension_semantics = [#tpu.dimension_semantics<parallel>], iteration_bounds = array<i64: 1>, scalar_prefetch = 0 : i64, scratch_operands = 0 : i64, tpu.core_type = #tpu.core_type<tc>, window_params = [{transform_indices = @transform_0, window_bounds = array<i64: 8, 128>}, {pipeline_mode = #tpu.pipeline_mode<synchronous>, transform_indices = @transform_1, window_bounds = array<i64: 128, 256>}, {pipeline_mode = #tpu.pipeline_mode<synchronous>, transform_indices = @transform_2, window_bounds = array<i64: 1, 256>}, {pipeline_mode = #tpu.pipeline_mode<synchronous>, transform_indices = @transform_3, window_bounds = array<i64: 256, 256>}, {pipeline_mode = #tpu.pipeline_mode<synchronous>, transform_indices = @transform_4, window_bounds = array<i64: 1, 256>}, {pipeline_mode = #tpu.pipeline_mode<synchronous>, transform_indices = @transform_5, window_bounds = array<i64: 256, 256>}, {pipeline_mode = #tpu.pipeline_mode<synchronous>, transform_indices = @transform_6, window_bounds = array<i64: 1, 256>}, {pipeline_mode = #tpu.pipeline_mode<synchronous>, transform_indices = @transform_7, window_bounds = array<i64: 256, 128>}, {pipeline_mode = #tpu.pipeline_mode<synchronous>, transform_indices = @transform_8, window_bounds = array<i64: 1, 128>}, {transform_indices = @transform_9, window_bounds = array<i64: 8, 128>}, {transform_indices = @transform_10, window_bounds = array<i64: 8, 128>}]} {
    %c0 = arith.constant 0 : index
    %c0_0 = arith.constant 0 : index
    %0 = vector.load %arg1[%c0, %c0_0] : memref<8x128xbf16, #tpu.memory_space<vmem>>, vector<8x128xbf16>
    %c0_1 = arith.constant 0 : index
    %c0_2 = arith.constant 0 : index
    %1 = vector.load %arg2[%c0_1, %c0_2] : memref<128x256xbf16, #tpu.memory_space<vmem>>, vector<128x256xbf16>
    %c0_3 = arith.constant 0 : index
    %c0_4 = arith.constant 0 : index
    %2 = vector.load %arg3[%c0_3, %c0_4] : memref<1x256xf32, #tpu.memory_space<vmem>>, vector<1x256xf32>
    %cst = arith.constant dense<0.000000e+00> : vector<8x256xf32>
    %3 = tpu.matmul %0, %1, %cst {dimension_numbers = #tpu.dot_dimension_numbers<[1], [0], [0], [1], [0, 0, 1, 1], [], []>} : vector<8x128xbf16>, vector<128x256xbf16>, vector<8x256xf32> -> vector<8x256xf32>
    %4 = vector.broadcast %2 : vector<1x256xf32> to vector<8x256xf32>
    %5 = arith.addf %3, %4 : vector<8x256xf32>
    %cst_5 = arith.constant 0.000000e+00 : f32
    %6 = vector.broadcast %cst_5 : f32 to vector<8x256xf32>
    %7 = arith.maximumf %5, %6 : vector<8x256xf32>
    %8 = arith.truncf %7 : vector<8x256xf32> to vector<8x256xbf16>
    %c0_6 = arith.constant 0 : index
    %c0_7 = arith.constant 0 : index
    %9 = vector.load %arg4[%c0_6, %c0_7] : memref<256x256xbf16, #tpu.memory_space<vmem>>, vector<256x256xbf16>
    %c0_8 = arith.constant 0 : index
    %c0_9 = arith.constant 0 : index
    %10 = vector.load %arg5[%c0_8, %c0_9] : memref<1x256xf32, #tpu.memory_space<vmem>>, vector<1x256xf32>
    %cst_10 = arith.constant dense<0.000000e+00> : vector<8x256xf32>
    %11 = tpu.matmul %8, %9, %cst_10 {dimension_numbers = #tpu.dot_dimension_numbers<[1], [0], [0], [1], [0, 0, 1, 1], [], []>} : vector<8x256xbf16>, vector<256x256xbf16>, vector<8x256xf32> -> vector<8x256xf32>
    %12 = vector.broadcast %10 : vector<1x256xf32> to vector<8x256xf32>
    %13 = arith.addf %11, %12 : vector<8x256xf32>
    %cst_11 = arith.constant 0.000000e+00 : f32
    %14 = vector.broadcast %cst_11 : f32 to vector<8x256xf32>
    %15 = arith.maximumf %13, %14 : vector<8x256xf32>
    %16 = arith.truncf %15 : vector<8x256xf32> to vector<8x256xbf16>
    %c0_12 = arith.constant 0 : index
    %c0_13 = arith.constant 0 : index
    %17 = vector.load %arg6[%c0_12, %c0_13] : memref<256x256xbf16, #tpu.memory_space<vmem>>, vector<256x256xbf16>
    %c0_14 = arith.constant 0 : index
    %c0_15 = arith.constant 0 : index
    %18 = vector.load %arg7[%c0_14, %c0_15] : memref<1x256xf32, #tpu.memory_space<vmem>>, vector<1x256xf32>
    %cst_16 = arith.constant dense<0.000000e+00> : vector<8x256xf32>
    %19 = tpu.matmul %16, %17, %cst_16 {dimension_numbers = #tpu.dot_dimension_numbers<[1], [0], [0], [1], [0, 0, 1, 1], [], []>} : vector<8x256xbf16>, vector<256x256xbf16>, vector<8x256xf32> -> vector<8x256xf32>
    %20 = vector.broadcast %18 : vector<1x256xf32> to vector<8x256xf32>
    %21 = arith.addf %19, %20 : vector<8x256xf32>
    %cst_17 = arith.constant 0.000000e+00 : f32
    %22 = vector.broadcast %cst_17 : f32 to vector<8x256xf32>
    %23 = arith.maximumf %21, %22 : vector<8x256xf32>
    %24 = arith.truncf %23 : vector<8x256xf32> to vector<8x256xbf16>
    %c0_18 = arith.constant 0 : index
    %c0_19 = arith.constant 0 : index
    %25 = vector.load %arg8[%c0_18, %c0_19] : memref<256x128xbf16, #tpu.memory_space<vmem>>, vector<256x128xbf16>
    %c0_20 = arith.constant 0 : index
    %c0_21 = arith.constant 0 : index
    %26 = vector.load %arg9[%c0_20, %c0_21] : memref<1x128xf32, #tpu.memory_space<vmem>>, vector<1x128xf32>
    %cst_22 = arith.constant dense<0.000000e+00> : vector<8x128xf32>
    %27 = tpu.matmul %24, %25, %cst_22 {dimension_numbers = #tpu.dot_dimension_numbers<[1], [0], [0], [1], [0, 0, 1, 1], [], []>} : vector<8x256xbf16>, vector<256x128xbf16>, vector<8x128xf32> -> vector<8x128xf32>
    %28 = vector.broadcast %26 : vector<1x128xf32> to vector<8x128xf32>
    %29 = arith.addf %27, %28 : vector<8x128xf32>
    %cst_23 = arith.constant 0.000000e+00 : f32
    %30 = vector.broadcast %cst_23 : f32 to vector<8x128xf32>
    %31 = arith.maximumf %29, %30 : vector<8x128xf32>
    %32 = math.absf %29 : vector<8x128xf32>
    %cst_24 = arith.constant 0.000000e+00 : f32
    %33 = vector.broadcast %cst_24 : f32 to vector<8x128xf32>
    %34 = arith.subf %33, %32 : vector<8x128xf32>
    %35 = math.exp %34 : vector<8x128xf32>
    %36 = math.log1p %35 : vector<8x128xf32>
    %37 = arith.addf %31, %36 : vector<8x128xf32>
    %c0_25 = arith.constant 0 : index
    %c0_26 = arith.constant 0 : index
    %38 = vector.load %arg10[%c0_25, %c0_26] : memref<8x128xi8, #tpu.memory_space<vmem>>, vector<8x128xi8>
    %c0_i8 = arith.constant 0 : i8
    %39 = vector.broadcast %c0_i8 : i8 to vector<8x128xi8>
    %40 = arith.cmpi ne, %38, %39 : vector<8x128xi8>
    %cst_27 = arith.constant 0.000000e+00 : f32
    %41 = vector.broadcast %cst_27 : f32 to vector<8x128xf32>
    %42 = arith.select %40, %37, %41 : vector<8x128xi1>, vector<8x128xf32>
    %c0_28 = arith.constant 0 : index
    %c0_29 = arith.constant 0 : index
    %43 = vector.load %arg11[%c0_28, %c0_29] : memref<8x128xf32, #tpu.memory_space<vmem>>, vector<8x128xf32>
    tpu.vector_store %arg11[%c0_28, %c0_29], %42 {strides = array<i32>} : memref<8x128xf32, #tpu.memory_space<vmem>>, vector<8x128xf32>,
    return
  }
  func.func @transform_0(%arg0: i32) -> (i32, i32) {
    %c0_i32 = arith.constant 0 : i32
    %c0_i32_0 = arith.constant 0 : i32
    return %arg0, %c0_i32 : i32, i32
  }
  func.func @transform_1(%arg0: i32) -> (i32, i32) {
    %c0_i32 = arith.constant 0 : i32
    %c0_i32_0 = arith.constant 0 : i32
    %c0_i32_1 = arith.constant 0 : i32
    return %c0_i32, %c0_i32_0 : i32, i32
  }
  func.func @transform_2(%arg0: i32) -> (i32, i32) {
    %c0_i32 = arith.constant 0 : i32
    %c0_i32_0 = arith.constant 0 : i32
    %c0_i32_1 = arith.constant 0 : i32
    return %c0_i32, %c0_i32_0 : i32, i32
  }
  func.func @transform_3(%arg0: i32) -> (i32, i32) {
    %c0_i32 = arith.constant 0 : i32
    %c0_i32_0 = arith.constant 0 : i32
    %c0_i32_1 = arith.constant 0 : i32
    return %c0_i32, %c0_i32_0 : i32, i32
  }
  func.func @transform_4(%arg0: i32) -> (i32, i32) {
    %c0_i32 = arith.constant 0 : i32
    %c0_i32_0 = arith.constant 0 : i32
    %c0_i32_1 = arith.constant 0 : i32
    return %c0_i32, %c0_i32_0 : i32, i32
  }
  func.func @transform_5(%arg0: i32) -> (i32, i32) {
    %c0_i32 = arith.constant 0 : i32
    %c0_i32_0 = arith.constant 0 : i32
    %c0_i32_1 = arith.constant 0 : i32
    return %c0_i32, %c0_i32_0 : i32, i32
  }
  func.func @transform_6(%arg0: i32) -> (i32, i32) {
    %c0_i32 = arith.constant 0 : i32
    %c0_i32_0 = arith.constant 0 : i32
    %c0_i32_1 = arith.constant 0 : i32
    return %c0_i32, %c0_i32_0 : i32, i32
  }
  func.func @transform_7(%arg0: i32) -> (i32, i32) {
    %c0_i32 = arith.constant 0 : i32
    %c0_i32_0 = arith.constant 0 : i32
    %c0_i32_1 = arith.constant 0 : i32
    return %c0_i32, %c0_i32_0 : i32, i32
  }
  func.func @transform_8(%arg0: i32) -> (i32, i32) {
    %c0_i32 = arith.constant 0 : i32
    %c0_i32_0 = arith.constant 0 : i32
    %c0_i32_1 = arith.constant 0 : i32
    return %c0_i32, %c0_i32_0 : i32, i32
  }
  func.func @transform_9(%arg0: i32) -> (i32, i32) {
    %c0_i32 = arith.constant 0 : i32
    %c0_i32_0 = arith.constant 0 : i32
    return %arg0, %c0_i32 : i32, i32
  }
  func.func @transform_10(%arg0: i32) -> (i32, i32) {
    %c0_i32 = arith.constant 0 : i32
    %c0_i32_0 = arith.constant 0 : i32
    return %arg0, %c0_i32 : i32, i32
  }
}

</mosaic_0001>

<bundles_post_ra>
// kernel: _lambda_.1
= control target key start
LH: loop header
LB: loop body
LE: loop exit
PB: predicated region body
PF: predicated region fallthrough
CT: control target
= control target key end

     0   :  { %15 = vsyncpa [#allocation3], 0  ;;  %s1621_s0 = inlined_call_operand.vmem [shape: bf16[8,128], index: 0, kind: input, shape index: {}]   ;;  %s1622_s1 = inlined_call_operand.hbm [shape: bf16[128,256], index: 1, kind: input, shape index: {}]   ;;  %s1623_s2 = inlined_call_operand.vmem [shape: f32[1,256], index: 2, kind: input, shape index: {}]   ;;  %s1624_s3 = inlined_call_operand.hbm [shape: bf16[256,256], index: 3, kind: input, shape index: {}]   ;;  %s1625_s4 = inlined_call_operand.vmem [shape: f32[1,256], index: 4, kind: input, shape index: {}]   ;;  %s1626_s5 = inlined_call_operand.hbm [shape: bf16[256,256], index: 5, kind: input, shape index: {}]   ;;  %s1627_s6 = inlined_call_operand.vmem [shape: f32[1,256], index: 6, kind: input, shape index: {}]   ;;  %s1628_s7 = inlined_call_operand.hbm [shape: bf16[256,128], index: 7, kind: input, shape index: {}]   ;;  %s1629_s8 = inlined_call_operand.vmem [shape: f32[1,128], index: 8, kind: input, shape index: {}]   ;;  %s1630_s9 = inlined_call_operand.vmem [shape: s8[8,128], index: 9, kind: input, shape index: {}]   ;;  %s1631_s10 = inlined_call_operand.vmem [shape: f32[8,128], index: 10, kind: output, shape index: {}]  }
   0x1   :  { %16 = vsyncpa [#allocation5], 0 }
   0x2   :  { %17 = vsyncpa [#allocation8], 0  ;;  %s39_s15 = sshll.u32 %s1624_s3, 4  ;;  %s1524_s16 = smov [#allocation4]   ;;  %s40_s15 = int_to_ptr.hbm [resolvable:$true] %s39_s15 }
   0x3   :  { %s41_s17 = sshll.u32 %s1524_s16, 4  ;;  %s24_s20 = sshll.u32 %s1622_s1, 4  ;;  %s42_s17 = int_to_ptr.vmem [resolvable:$true] %s41_s17  ;;  %s25_s20 = int_to_ptr.hbm [resolvable:$true] %s24_s20 }
   0x4   :  { %s1525_s21 = smov 128   ;;  %s1526_s22 = smov 8  }
   0x5   :  { %47 = dma.hbm_to_vmem [thread:$0]  %s40_s15, 4096, %s42_s17, [#allocation5], %s1525_s21, %s1525_s21, %s1526_s22  }
   0x6   :  { %s1527_s23 = smov [#allocation2]   ;;  %s54_s27 = sshll.u32 %s1626_s5, 4  ;;  %s55_s27 = int_to_ptr.hbm [resolvable:$true] %s54_s27 }
   0x7   :  { %s26_s24 = sshll.u32 %s1527_s23, 4  ;;  %s69_s29 = sshll.u32 %s1628_s7, 4  ;;  %s27_s24 = int_to_ptr.vmem [resolvable:$true] %s26_s24  ;;  %s70_s29 = int_to_ptr.hbm [resolvable:$true] %s69_s29 }
   0x8   :  { %32 = dma.hbm_to_vmem [thread:$0]  %s25_s20, 2048, %s27_s24, [#allocation3], %s1525_s21, %s1525_s21, %s1526_s22  }
   0x9   :  { %s1528_s30 = smov [#allocation6]   ;;  %s1529_s1 = smov [#allocation7]  }
   0xa   :  { %s56_s11 = sshll.u32 %s1528_s30, 4  ;;  %s71_s12 = sshll.u32 %s1529_s1, 4  ;;  %s57_s11 = int_to_ptr.vmem [resolvable:$true] %s56_s11  ;;  %s72_s12 = int_to_ptr.vmem [resolvable:$true] %s71_s12 }
   0xb   :  { %62 = dma.hbm_to_vmem [thread:$0]  %s55_s27, 4096, %s57_s11, [#allocation5], %s1525_s21, %s1525_s21, %s1526_s22  }
   0xc   :  { %s1530_s13 = smov 64   ;;  %s1531_s14 = smov 4  }
   0xd   :  { %77 = dma.hbm_to_vmem [thread:$0]  %s70_s29, 2048, %s72_s12, [#allocation8], %s1530_s13, %s1530_s13, %s1531_s14  }
   0xe   :  { %1518 = dma.done.wait [#allocation3], 2048  }
   0xf   :  { %1519 = vsyncadd [#allocation3], 4294965248 }
  0x10   :  { %1520 = dma.done.wait [#allocation5], 8192  }
  0x11   :  { %1521 = vsyncadd [#allocation5], 4294959104 }
  0x12   :  { %1522 = dma.done.wait [#allocation8], 2048  }
  0x13   :  { %1523 = vsyncadd [#allocation8], 4294965248  ;;  %v986_v0 = vld [vmem:[#allocation2 + $0x70] sm:$0xf]  ;;  %v1327_v1 = vld [vmem:[#allocation2 + $0x74] sm:$0xf0] }
  0x14   :  { %v1326_v2 = vld [vmem:[#allocation2 + $0x74] sm:$0xf]  ;;  %v987_v3 = vor.u32 %v1327_v1, %v986_v0  ;;  %v988_v4 = vld [vmem:[#allocation2 + $0x78] sm:$0xf0]  ;;  %v978_v5 = vld [vmem:[#allocation2 + $0x60] sm:$0xf] }
  0x15   :  { %v1325_v6 = vld [vmem:[#allocation2 + $0x64] sm:$0xf0]  ;;  %v991_v7 = vor.u32 %v1326_v2, %v988_v4  ;;  %v1324_v8 = vld [vmem:[#allocation2 + $0x64] sm:$0xf]  ;;  %v980_v9 = vld [vmem:[#allocation2 + $0x68] sm:$0xf0] }
  0x16   :  { %203 = vmatpush.bf16.msra.mxu0 %v987_v3  ;;  %v979_v10 = vor.u32 %v1325_v6, %v978_v5  ;;  %v983_v11 = vor.u32 %v1324_v8, %v980_v9  ;;  %v970_v12 = vld [vmem:[#allocation2 + $0x50] sm:$0xf]  ;;  %v1323_v13 = vld [vmem:[#allocation2 + $0x54] sm:$0xf0]  ;;  %v1322_v14 = vld [vmem:[#allocation2 + $0x54] sm:$0xf] }
  0x17   :  { %216 = vmatpush.bf16.msra.mxu1 %v991_v7  ;;  %v972_v15 = vld [vmem:[#allocation2 + $0x58] sm:$0xf0]  ;;  %v971_v16 = vor.u32 %v1323_v13, %v970_v12  ;;  %v962_v18 = vld [vmem:[#allocation2 + $0x40] sm:$0xf]  ;;  %v1321_v19 = vld [vmem:[#allocation2 + $0x44] sm:$0xf0] }
  0x18   :  { %v975_v17 = vor.u32 %v1322_v14, %v972_v15  ;;  %v1320_v20 = vld [vmem:[#allocation2 + $0x44] sm:$0xf]  ;;  %v964_v21 = vld [vmem:[#allocation2 + $0x48] sm:$0xf0]  ;;  %v963_v22 = vor.u32 %v1321_v19, %v962_v18  ;;  %v1050_v23 = vld [vmem:[#allocation4 + $0x70] sm:$0xf] }
  0x19   :  { %v1343_v24 = vld [vmem:[#allocation4 + $0x74] sm:$0xf0]  ;;  %v1114_v25 = vld [vmem:[#allocation4 + $0xf0] sm:$0xf]  ;;  %v967_v26 = vor.u32 %v1320_v20, %v964_v21  ;;  %v1318_v31 = vld [vmem:[#allocation2 + $0x34] sm:$0xf] }
  0x1a   :  { %204 = vmatpush.bf16.msra.mxu0 %v979_v10  ;;  %v954_v27 = vld [vmem:[#allocation2 + $0x30] sm:$0xf]  ;;  %v1319_v28 = vld [vmem:[#allocation2 + $0x34] sm:$0xf0]  ;;  %v1051_v29 = vor.u32 %v1343_v24, %v1050_v23  ;;  %v956_v32 = vld [vmem:[#allocation2 + $0x38] sm:$0xf0] }
  0x1b   :  { %217 = vmatpush.bf16.msra.mxu1 %v983_v11  ;;  %v1359_v30 = vld [vmem:[#allocation4 + $0xf4] sm:$0xf0]  ;;  %v1042_v34 = vld [vmem:[#allocation4 + $0x60] sm:$0xf]  ;;  %v1341_v35 = vld [vmem:[#allocation4 + $0x64] sm:$0xf0]  ;;  %v955_v38 = vor.u32 %v1319_v28, %v954_v27  ;;  %v959_v43 = vor.u32 %v1318_v31, %v956_v32 }
  0x1c   :  { %v1115_v33 = vor.u32 %v1359_v30, %v1114_v25  ;;  %431 = vmatpush.bf16.msra.mxu2 %v1051_v29  ;;  %v1106_v36 = vld [vmem:[#allocation4 + $0xe0] sm:$0xf]  ;;  %v1357_v37 = vld [vmem:[#allocation4 + $0xe4] sm:$0xf0]  ;;  %v1043_v41 = vor.u32 %v1341_v35, %v1042_v34  ;;  %v1316_v44 = vld [vmem:[#allocation2 + $0x24] sm:$0xf] }
  0x1d   :  { %v946_v39 = vld [vmem:[#allocation2 + $0x20] sm:$0xf]  ;;  %v1317_v40 = vld [vmem:[#allocation2 + $0x24] sm:$0xf0]  ;;  %v1107_v42 = vor.u32 %v1357_v37, %v1106_v36  ;;  %v1034_v45 = vld [vmem:[#allocation4 + $0x50] sm:$0xf] }
  0x1e   :  { %205 = vmatpush.bf16.msra.mxu0 %v971_v16  ;;  %444 = vmatpush.bf16.msra.mxu3 %v1115_v33  ;;  %v1339_v46 = vld [vmem:[#allocation4 + $0x54] sm:$0xf0]  ;;  %v948_v47 = vld [vmem:[#allocation2 + $0x28] sm:$0xf0]  ;;  %v1098_v48 = vld [vmem:[#allocation4 + $0xd0] sm:$0xf]  ;;  %v947_v51 = vor.u32 %v1317_v40, %v946_v39 }
  0x1f   :  { %218 = vmatpush.bf16.msra.mxu1 %v975_v17  ;;  %v1355_v49 = vld [vmem:[#allocation4 + $0xd4] sm:$0xf0]  ;;  %v1035_v50 = vor.u32 %v1339_v46, %v1034_v45  ;;  %v938_v52 = vld [vmem:[#allocation2 + $0x10] sm:$0xf]  ;;  %v1026_v54 = vld [vmem:[#allocation4 + $0x40] sm:$0xf]  ;;  %v951_v56 = vor.u32 %v1316_v44, %v948_v47 }
  0x20   :  { %432 = vmatpush.bf16.msra.mxu2 %v1043_v41  ;;  %v1099_v53 = vor.u32 %v1355_v49, %v1098_v48  ;;  %v1337_v55 = vld [vmem:[#allocation4 + $0x44] sm:$0xf0]  ;;  %v1315_v57 = vld [vmem:[#allocation2 + $0x14] sm:$0xf0]  ;;  %v1090_v58 = vld [vmem:[#allocation4 + $0xc0] sm:$0xf] }
  0x21   :  { %v1353_v59 = vld [vmem:[#allocation4 + $0xc4] sm:$0xf0]  ;;  %v1314_v60 = vld [vmem:[#allocation2 + $0x14] sm:$0xf]  ;;  %v940_v61 = vld [vmem:[#allocation2 + $0x18] sm:$0xf0]  ;;  %v1027_v63 = vor.u32 %v1337_v55, %v1026_v54  ;;  %v939_v0 = vor.u32 %v1315_v57, %v938_v52 }
  0x22   :  { %206 = vmatpush.bf16.msra.mxu0 %v963_v22  ;;  %445 = vmatpush.bf16.msra.mxu3 %v1107_v42  ;;  %v930_v62 = vld [vmem:[#allocation2] sm:$0xf]  ;;  %v1313_v1 = vld [vmem:[#allocation2 + $0x4] sm:$0xf0]  ;;  %v1091_v2 = vor.u32 %v1353_v59, %v1090_v58  ;;  %v1018_v3 = vld [vmem:[#allocation4 + $0x30] sm:$0xf]  ;;  %v943_v5 = vor.u32 %v1314_v60, %v940_v61 }
  0x23   :  { %219 = vmatpush.bf16.msra.mxu1 %v967_v26  ;;  %v1335_v4 = vld [vmem:[#allocation4 + $0x34] sm:$0xf0]  ;;  %v1312_v6 = vld [vmem:[#allocation2 + $0x4] sm:$0xf]  ;;  %v1082_v7 = vld [vmem:[#allocation4 + $0xb0] sm:$0xf]  ;;  %v931_v15 = vor.u32 %v1313_v1, %v930_v62 }
  0x24   :  { %433 = vmatpush.bf16.msra.mxu2 %v1035_v50  ;;  %v1351_v8 = vld [vmem:[#allocation4 + $0xb4] sm:$0xf0]  ;;  %v932_v9 = vld [vmem:[#allocation2 + $0x8] sm:$0xf0]  ;;  %v1342_v10 = vld [vmem:[#allocation4 + $0x74] sm:$0xf]  ;;  %v1019_v14 = vor.u32 %v1335_v4, %v1018_v3 }
  0x25   :  { %v1052_v11 = vld [vmem:[#allocation4 + $0x78] sm:$0xf0]  ;;  %v1358_v12 = vld [vmem:[#allocation4 + $0xf4] sm:$0xf]  ;;  %v1083_v16 = vor.u32 %v1351_v8, %v1082_v7  ;;  %v1010_v17 = vld [vmem:[#allocation4 + $0x20] sm:$0xf]  ;;  %v935_v19 = vor.u32 %v1312_v6, %v932_v9 }
  0x26   :  { %207 = vmatpush.bf16.msra.mxu0 %v955_v38  ;;  %446 = vmatpush.bf16.msra.mxu3 %v1099_v53  ;;  %v1116_v13 = vld [vmem:[#allocation4 + $0xf8] sm:$0xf0]  ;;  %v1333_v18 = vld [vmem:[#allocation4 + $0x24] sm:$0xf0]  ;;  %v1055_v20 = vor.u32 %v1342_v10, %v1052_v11  ;;  %v1074_v21 = vld [vmem:[#allocation4 + $0xa0] sm:$0xf] }
  0x27   :  { %220 = vmatpush.bf16.msra.mxu1 %v959_v43  ;;  %v1349_v22 = vld [vmem:[#allocation4 + $0xa4] sm:$0xf0]  ;;  %v1119_v23 = vor.u32 %v1358_v12, %v1116_v13  ;;  %v1340_v24 = vld [vmem:[#allocation4 + $0x64] sm:$0xf]  ;;  %v1044_v25 = vld [vmem:[#allocation4 + $0x68] sm:$0xf0]  ;;  %v1011_v28 = vor.u32 %v1333_v18, %v1010_v17 }
  0x28   :  { %434 = vmatpush.bf16.msra.mxu2 %v1027_v63  ;;  %v1356_v26 = vld [vmem:[#allocation4 + $0xe4] sm:$0xf]  ;;  %v1108_v27 = vld [vmem:[#allocation4 + $0xe8] sm:$0xf0]  ;;  %v100_v29 = vld [vmem:[%s1621_s0] sm:$0xf]  ;;  %v1075_v30 = vor.u32 %v1349_v22, %v1074_v21  ;;  %v1047_v31 = vor.u32 %v1340_v24, %v1044_v25 }
  0x29   :  { %v1111_v32 = vor.u32 %v1356_v26, %v1108_v27  ;;  %v1338_v33 = vld [vmem:[#allocation4 + $0x54] sm:$0xf]  ;;  %v1036_v34 = vld [vmem:[#allocation4 + $0x58] sm:$0xf0]  ;;  %v1336_v39 = vld [vmem:[#allocation4 + $0x44] sm:$0xf] }
  0x2a   :  { %208 = vmatpush.bf16.msra.mxu0 %v947_v51  ;;  %447 = vmatpush.bf16.msra.mxu3 %v1091_v2  ;;  %v1354_v35 = vld [vmem:[#allocation4 + $0xd4] sm:$0xf]  ;;  %v1100_v36 = vld [vmem:[#allocation4 + $0xd8] sm:$0xf0]  ;;  %v1039_v37 = vor.u32 %v1338_v33, %v1036_v34  ;;  %v1028_v40 = vld [vmem:[#allocation4 + $0x48] sm:$0xf0] }
  0x2b   :  { %221 = vmatpush.bf16.msra.mxu1 %v951_v56  ;;  %v1103_v38 = vor.u32 %v1354_v35, %v1100_v36  ;;  %v1352_v41 = vld [vmem:[#allocation4 + $0xc4] sm:$0xf]  ;;  %v1092_v42 = vld [vmem:[#allocation4 + $0xc8] sm:$0xf0]  ;;  %v1031_v43 = vor.u32 %v1336_v39, %v1028_v40  ;;  %v1334_v45 = vld [vmem:[#allocation4 + $0x34] sm:$0xf] }
  0x2c   :  { %435 = vmatpush.bf16.msra.mxu2 %v1019_v14  ;;  %v1095_v44 = vor.u32 %v1352_v41, %v1092_v42  ;;  %v1020_v46 = vld [vmem:[#allocation4 + $0x38] sm:$0xf0]  ;;  %v1350_v47 = vld [vmem:[#allocation4 + $0xb4] sm:$0xf]  ;;  %v1332_v51 = vld [vmem:[#allocation4 + $0x24] sm:$0xf] }
  0x2d   :  { %v1084_v48 = vld [vmem:[#allocation4 + $0xb8] sm:$0xf0]  ;;  %v1023_v49 = vor.u32 %v1334_v45, %v1020_v46  ;;  %v1012_v52 = vld [vmem:[#allocation4 + $0x28] sm:$0xf0]  ;;  %v1348_v53 = vld [vmem:[#allocation4 + $0xa4] sm:$0xf] }
  0x2e   :  { %209 = vmatpush.bf16.msra.mxu0 %v939_v0  ;;  %448 = vmatpush.bf16.msra.mxu3 %v1083_v16  ;;  %v1087_v50 = vor.u32 %v1350_v47, %v1084_v48  ;;  %v1076_v54 = vld [vmem:[#allocation4 + $0xa8] sm:$0xf0]  ;;  %v1015_v55 = vor.u32 %v1332_v51, %v1012_v52  ;;  %v1002_v57 = vld [vmem:[#allocation4 + $0x10] sm:$0xf]  ;;  %v1331_v58 = vld [vmem:[#allocation4 + $0x14] sm:$0xf0] }
  0x2f   :  { %222 = vmatpush.bf16.msra.mxu1 %v943_v5  ;;  %v1079_v56 = vor.u32 %v1348_v53, %v1076_v54  ;;  %v1066_v59 = vld [vmem:[#allocation4 + $0x90] sm:$0xf]  ;;  %v1003_v60 = vor.u32 %v1331_v58, %v1002_v57  ;;  %v1347_v61 = vld [vmem:[#allocation4 + $0x94] sm:$0xf0]  ;;  %v1330_v62 = vld [vmem:[#allocation4 + $0x14] sm:$0xf] }
  0x30   :  { %436 = vmatpush.bf16.msra.mxu2 %v1011_v28  ;;  %v1004_v63 = vld [vmem:[#allocation4 + $0x18] sm:$0xf0]  ;;  %v1067_v0 = vor.u32 %v1347_v61, %v1066_v59  ;;  %v1346_v2 = vld [vmem:[#allocation4 + $0x94] sm:$0xf]  ;;  %v994_v5 = vld [vmem:[#allocation4] sm:$0xf] }
  0x31   :  { %v1007_v1 = vor.u32 %v1330_v62, %v1004_v63  ;;  %v1068_v3 = vld [vmem:[#allocation4 + $0x98] sm:$0xf0]  ;;  %v1329_v6 = vld [vmem:[#allocation4 + $0x4] sm:$0xf0]  ;;  %v1058_v7 = vld [vmem:[#allocation4 + $0x80] sm:$0xf] }
  0x32   :  { %210 = vmatpush.bf16.msra.mxu0 %v931_v15  ;;  %449 = vmatpush.bf16.msra.mxu3 %v1075_v30  ;;  %v1071_v4 = vor.u32 %v1346_v2, %v1068_v3  ;;  %v995_v8 = vor.u32 %v1329_v6, %v994_v5  ;;  %v1345_v9 = vld [vmem:[#allocation4 + $0x84] sm:$0xf0]  ;;  %v1328_v10 = vld [vmem:[#allocation4 + $0x4] sm:$0xf]  ;;  %v996_v11 = vld [vmem:[#allocation4 + $0x8] sm:$0xf0] }
  0x33   :  { %223 = vmatpush.bf16.msra.mxu1 %v935_v19  ;;  %v1059_v12 = vor.u32 %v1345_v9, %v1058_v7  ;;  %v999_v13 = vor.u32 %v1328_v10, %v996_v11  ;;  %v1344_v14 = vld [vmem:[#allocation4 + $0x84] sm:$0xf]  ;;  %v1060_v15 = vld [vmem:[#allocation4 + $0x88] sm:$0xf0]  ;;  %v1242_v17 = vld [vmem:[#allocation6 + $0xf0] sm:$0xf] }
  0x34   :  { %437 = vmatpush.bf16.msra.mxu2 %v1003_v60  ;;  %v1063_v16 = vor.u32 %v1344_v14, %v1060_v15  ;;  %v1391_v18 = vld [vmem:[#allocation6 + $0xf4] sm:$0xf0]  ;;  %v1390_v19 = vld [vmem:[#allocation6 + $0xf4] sm:$0xf]  ;;  %v1244_v21 = vld [vmem:[#allocation6 + $0xf8] sm:$0xf0] }
  0x35   :  { %211 = vmatmul.bf16.vlgmr.msra.gmra.mxu0 %v100_v29  ;;  %v1234_v22 = vld [vmem:[#allocation6 + $0xe0] sm:$0xf]  ;;  %v1247_v24 = vor.u32 %v1390_v19, %v1244_v21  ;;  %v1388_v25 = vld [vmem:[#allocation6 + $0xe4] sm:$0xf]  ;;  %v1236_v26 = vld [vmem:[#allocation6 + $0xe8] sm:$0xf0] }
  0x36   :  { %457 = vmatpush.bf16.msrb.mxu0 %v1055_v20  ;;  %224 = vmatmul.bf16.vlgmr.msra.gmra.mxu1 %v100_v29  ;;  %v1243_v20 = vor.u32 %v1391_v18, %v1242_v17  ;;  %v1178_v27 = vld [vmem:[#allocation6 + $0x70] sm:$0xf]  ;;  %v1375_v29 = vld [vmem:[#allocation6 + $0x74] sm:$0xf0]  ;;  %v1374_v30 = vld [vmem:[#allocation6 + $0x74] sm:$0xf] }
  0x37   :  { %470 = vmatpush.bf16.msrb.mxu1 %v1119_v23  ;;  %450 = vmatpush.bf16.msra.mxu3 %v1067_v0  ;;  %v1389_v23 = vld [vmem:[#allocation6 + $0xe4] sm:$0xf0]  ;;  %v1179_v33 = vor.u32 %v1375_v29, %v1178_v27  ;;  %v1226_v35 = vld [vmem:[#allocation6 + $0xd0] sm:$0xf]  ;;  %v1387_v36 = vld [vmem:[#allocation6 + $0xd4] sm:$0xf0] }
  0x38   :  { %438 = vmatpush.bf16.msra.mxu2 %v995_v8  ;;  %v1235_v28 = vor.u32 %v1389_v23, %v1234_v22  ;;  %v1170_v39 = vld [vmem:[#allocation6 + $0x60] sm:$0xf]  ;;  %v1373_v40 = vld [vmem:[#allocation6 + $0x64] sm:$0xf0]  ;;  %v1372_v42 = vld [vmem:[#allocation6 + $0x64] sm:$0xf] }
  0x39   :  { %v1171_v41 = vor.u32 %v1373_v40, %v1170_v39  ;;  %v1218_v46 = vld [vmem:[#allocation6 + $0xc0] sm:$0xf]  ;;  %v1385_v47 = vld [vmem:[#allocation6 + $0xc4] sm:$0xf0]  ;;  %v1370_v51 = vld [vmem:[#allocation6 + $0x54] sm:$0xf] }
  0x3a   :  { %458 = vmatpush.bf16.msrb.mxu0 %v1047_v31  ;;  %v1180_v31 = vld [vmem:[#allocation6 + $0x78] sm:$0xf0]  ;;  %v1384_v52 = vld [vmem:[#allocation6 + $0xc4] sm:$0xf]  ;;  %v1220_v53 = vld [vmem:[#allocation6 + $0xc8] sm:$0xf0]  ;;  %v1219_v58 = vor.u32 %v1385_v47, %v1218_v46 }
  0x3b   :  { %471 = vmatpush.bf16.msrb.mxu1 %v1111_v32  ;;  %451 = vmatpush.bf16.msra.mxu3 %v1059_v12  ;;  %v1239_v32 = vor.u32 %v1388_v25, %v1236_v26  ;;  %v1183_v34 = vor.u32 %v1374_v30, %v1180_v31  ;;  %v1164_v54 = vld [vmem:[#allocation6 + $0x58] sm:$0xf0]  ;;  %v1154_v57 = vld [vmem:[#allocation6 + $0x40] sm:$0xf]  ;;  %v1369_v59 = vld [vmem:[#allocation6 + $0x44] sm:$0xf0]  ;;  %v1223_v62 = vor.u32 %v1384_v52, %v1220_v53 }
  0x3c   :  { %685 = vmatpush.bf16.msrb.mxu2 %v1179_v33  ;;  %v1368_v60 = vld [vmem:[#allocation6 + $0x44] sm:$0xf]  ;;  %v1156_v61 = vld [vmem:[#allocation6 + $0x48] sm:$0xf0]  ;;  %v1210_v63 = vld [vmem:[#allocation6 + $0xb0] sm:$0xf]  ;;  %v1155_v3 = vor.u32 %v1369_v59, %v1154_v57 }
  0x3d   :  { %v1383_v0 = vld [vmem:[#allocation6 + $0xb4] sm:$0xf0]  ;;  %v1212_v2 = vld [vmem:[#allocation6 + $0xb8] sm:$0xf0]  ;;  %v1202_v7 = vld [vmem:[#allocation6 + $0xa0] sm:$0xf] }
  0x3e   :  { %459 = vmatpush.bf16.msrb.mxu0 %v1039_v37  ;;  %v1386_v37 = vld [vmem:[#allocation6 + $0xd4] sm:$0xf]  ;;  %v1211_v5 = vor.u32 %v1383_v0, %v1210_v63  ;;  %v1381_v8 = vld [vmem:[#allocation6 + $0xa4] sm:$0xf0]  ;;  %v117_v9 = vld [vmem:[%s1623_s2] sm:$0x3] }
  0x3f   :  { %472 = vmatpush.bf16.msrb.mxu1 %v1103_v38  ;;  %698 = vmatpush.bf16.msrb.mxu3 %v1243_v20  ;;  %v1228_v38 = vld [vmem:[#allocation6 + $0xd8] sm:$0xf0]  ;;  %v1380_v10 = vld [vmem:[#allocation6 + $0xa4] sm:$0xf]  ;;  %v1204_v11 = vld [vmem:[#allocation6 + $0xa8] sm:$0xf0]  ;;  %v1203_v12 = vor.u32 %v1381_v8, %v1202_v7 }
  0x40   :  { %v1231_v48 = vor.u32 %v1386_v37, %v1228_v38  ;;  %686 = vmatpush.bf16.msrb.mxu2 %v1171_v41  ;;  %v1207_v14 = vor.u32 %v1380_v10, %v1204_v11  ;;  %v120_v15 = vperm.slane %v117_v9, 1  ;;  %v1146_v26 = vld [vmem:[#allocation6 + $0x30] sm:$0xf]  ;;  %v1367_v27 = vld [vmem:[#allocation6 + $0x34] sm:$0xf0] }
  0x41   :  { %v1147_v29 = vor.u32 %v1367_v27, %v1146_v26  ;;  %v1148_v30 = vld [vmem:[#allocation6 + $0x38] sm:$0xf0]  ;;  %v1379_v33 = vld [vmem:[#allocation6 + $0x94] sm:$0xf0]  ;;  %v1138_v38 = vld [vmem:[#allocation6 + $0x20] sm:$0xf] }
  0x42   :  { %460 = vmatpush.bf16.msrb.mxu0 %v1031_v43  ;;  %v1172_v43 = vld [vmem:[#allocation6 + $0x68] sm:$0xf0]  ;;  %v1365_v39 = vld [vmem:[#allocation6 + $0x24] sm:$0xf0]  ;;  %v1364_v40 = vld [vmem:[#allocation6 + $0x24] sm:$0xf] }
  0x43   :  { %473 = vmatpush.bf16.msrb.mxu1 %v1095_v44  ;;  %699 = vmatpush.bf16.msrb.mxu3 %v1235_v28  ;;  %v1227_v44 = vor.u32 %v1387_v36, %v1226_v35  ;;  %v1175_v45 = vor.u32 %v1372_v42, %v1172_v43  ;;  %v1366_v28 = vld [vmem:[#allocation6 + $0x34] sm:$0xf]  ;;  %v1196_v36 = vld [vmem:[#allocation6 + $0x98] sm:$0xf0]  ;;  %v1139_v41 = vor.u32 %v1365_v39, %v1138_v38  ;;  %v1140_v42 = vld [vmem:[#allocation6 + $0x28] sm:$0xf0] }
  0x44   :  { %v1151_v31 = vor.u32 %v1366_v28, %v1148_v30  ;;  %v1143_v43 = vor.u32 %v1364_v40, %v1140_v42  ;;  %v1376_v46 = vld [vmem:[#allocation6 + $0x84] sm:$0xf]  ;;  %v1362_v53 = vld [vmem:[#allocation6 + $0x14] sm:$0xf]  ;;  %v1361_v57 = vld [vmem:[#allocation6 + $0x4] sm:$0xf0] }
  0x45   :  { %v1399_v63 = vld [vmem:[#allocation7 + $0x38] sm:$0xff]  ;;  %v1406_v0 = vld [vmem:[#allocation7 + $0x70] sm:$0xff]  ;;  %v1401_v28 = vld [vmem:[#allocation7 + $0x48] sm:$0xff] }
  0x46   :  { %461 = vmatpush.bf16.msrb.mxu0 %v1023_v49  ;;  %v1162_v49 = vld [vmem:[#allocation6 + $0x50] sm:$0xf]  ;;  %v1395_v27 = vld [vmem:[#allocation7 + $0x18] sm:$0xff]  ;;  %v1400_v30 = vld [vmem:[#allocation7 + $0x40] sm:$0xff] }
  0x47   :  { %474 = vmatpush.bf16.msrb.mxu1 %v1087_v50  ;;  %v1371_v50 = vld [vmem:[#allocation6 + $0x54] sm:$0xf0]  ;;  %700 = vmatpush.bf16.msrb.mxu3 %v1227_v44  ;;  %v1186_v44 = vld [vmem:[#allocation6 + $0x80] sm:$0xf]  ;;  %v1402_v26 = vld [vmem:[#allocation7 + $0x50] sm:$0xff] }
  0x4a   :  { %462 = vmatpush.bf16.msrb.mxu0 %v1015_v55  ;;  %v1163_v55 = vor.u32 %v1371_v50, %v1162_v49  ;;  %v1130_v50 = vld [vmem:[#allocation6 + $0x10] sm:$0xf] }
  0x4b   :  { %475 = vmatpush.bf16.msrb.mxu1 %v1079_v56  ;;  %v1167_v56 = vor.u32 %v1370_v51, %v1164_v54  ;;  %701 = vmatpush.bf16.msrb.mxu3 %v1219_v58  ;;  %v1363_v51 = vld [vmem:[#allocation6 + $0x14] sm:$0xf0]  ;;  %v1132_v54 = vld [vmem:[#allocation6 + $0x18] sm:$0xf0]  ;;  %v1360_v58 = vld [vmem:[#allocation6 + $0x4] sm:$0xf] }
  0x4c   :  { %687 = vmatpush.bf16.msrb.mxu2 %v1163_v55  ;;  %v1131_v52 = vor.u32 %v1363_v51, %v1130_v50  ;;  %v1135_v55 = vor.u32 %v1362_v53, %v1132_v54  ;;  %v1417_v53 = vld [vmem:[%s1629_s8] ss:$0 sm:$0xff] }
  0x4e   :  { %463 = vmatpush.bf16.msrb.mxu0 %v1007_v1  ;;  %v1382_v1 = vld [vmem:[#allocation6 + $0xb4] sm:$0xf] }
  0x4f   :  { %476 = vmatpush.bf16.msrb.mxu1 %v1071_v4  ;;  %v1159_v4 = vor.u32 %v1368_v60, %v1156_v61  ;;  %v1215_v6 = vor.u32 %v1382_v1, %v1212_v2  ;;  %702 = vmatpush.bf16.msrb.mxu3 %v1211_v5  ;;  %v1124_v60 = vld [vmem:[#allocation6 + $0x8] sm:$0xf0]  ;;  %v1398_v1 = vld [vmem:[#allocation7 + $0x30] sm:$0xff]  ;;  %v265_v5 = vld [vmem:[%s1625_s4] sm:$0x3] }
  0x50   :  { %688 = vmatpush.bf16.msrb.mxu2 %v1155_v3  ;;  %v1127_v61 = vor.u32 %v1360_v58, %v1124_v60  ;;  %v1405_v2 = vld [vmem:[#allocation7 + $0x68] sm:$0xff]  ;;  %v267_v11 = vperm.slane %v265_v5, 0 }
  0x51   :  { %v1397_v3 = vld [vmem:[#allocation7 + $0x28] sm:$0xff] }
  0x52   :  { %464 = vmatpush.bf16.msrb.mxu0 %v999_v13  ;;  %v119_v13 = vperm.slane %v117_v9, 0 }
  0x53   :  { %477 = vmatpush.bf16.msrb.mxu1 %v1063_v16  ;;  %703 = vmatpush.bf16.msrb.mxu3 %v1203_v12 }
  0x54   :  { %689 = vmatpush.bf16.msrb.mxu2 %v1147_v29  ;;  %v1394_v29 = vld [vmem:[#allocation7 + $0x10] sm:$0xff] }
  0x56   :  { %711 = vmatpush.bf16.msra.mxu0 %v1183_v34  ;;  %v1378_v34 = vld [vmem:[#allocation6 + $0x94] sm:$0xf] }
  0x57   :  { %724 = vmatpush.bf16.msra.mxu1 %v1247_v24  ;;  %v1199_v37 = vor.u32 %v1378_v34, %v1196_v36  ;;  %v519_v34 = vld [vmem:[%s1627_s6] sm:$0x3] }
  0x58   :  { %690 = vmatpush.bf16.msrb.mxu2 %v1139_v41  ;;  %v521_v41 = vperm.slane %v519_v34, 0 }
  0x5a   :  { %712 = vmatpush.bf16.msra.mxu0 %v1175_v45  ;;  %v1377_v45 = vld [vmem:[#allocation6 + $0x84] sm:$0xf0] }
  0x5b   :  { %725 = vmatpush.bf16.msra.mxu1 %v1239_v32  ;;  %v1194_v32 = vld [vmem:[#allocation6 + $0x90] sm:$0xf]  ;;  %v1187_v47 = vor.u32 %v1377_v45, %v1186_v44 }
  0x5c   :  { %v1195_v35 = vor.u32 %v1379_v33, %v1194_v32  ;;  %691 = vmatpush.bf16.msrb.mxu2 %v1131_v52  ;;  %v1392_v32 = vld [vmem:[#allocation7] sm:$0xff] }
  0x5e   :  { %713 = vmatpush.bf16.msra.mxu0 %v1167_v56  ;;  %704 = vmatpush.bf16.msrb.mxu3 %v1195_v35  ;;  %v1122_v56 = vld [vmem:[#allocation6] sm:$0xf]  ;;  %v522_v35 = vperm.slane %v519_v34, 1 }
  0x5f   :  { %726 = vmatpush.bf16.msra.mxu1 %v1231_v48  ;;  %v1188_v48 = vld [vmem:[#allocation6 + $0x88] sm:$0xf0]  ;;  %v1123_v59 = vor.u32 %v1361_v57, %v1122_v56 }
  0x60   :  { %v1191_v49 = vor.u32 %v1376_v46, %v1188_v48 }
  0x61   :  { %692 = vmatpush.bf16.msrb.mxu2 %v1123_v59 }
  0x62   :  { %714 = vmatpush.bf16.msra.mxu0 %v1159_v4  ;;  %705 = vmatpush.bf16.msrb.mxu3 %v1187_v47  ;;  %v1404_v4 = vld [vmem:[#allocation7 + $0x60] sm:$0xff] }
  0x63   :  { %727 = vmatpush.bf16.msra.mxu1 %v1223_v62  ;;  %v1407_v62 = vld [vmem:[#allocation7 + $0x78] sm:$0xff] }
  0x66   :  { %715 = vmatpush.bf16.msra.mxu0 %v1151_v31  ;;  %v1393_v31 = vld [vmem:[#allocation7 + $0x8] sm:$0xff] }
  0x67   :  { %728 = vmatpush.bf16.msra.mxu1 %v1215_v6  ;;  %v268_v6 = vperm.slane %v265_v5, 1 }
  0x6a   :  { %716 = vmatpush.bf16.msra.mxu0 %v1143_v43 }
  0x6b   :  { %729 = vmatpush.bf16.msra.mxu1 %v1207_v14 }
  0x6e   :  { %717 = vmatpush.bf16.msra.mxu0 %v1135_v55 }
  0x6f   :  { %730 = vmatpush.bf16.msra.mxu1 %v1199_v37 }
  0x72   :  { %718 = vmatpush.bf16.msra.mxu0 %v1127_v61 }
  0x73   :  { %731 = vmatpush.bf16.msra.mxu1 %v1191_v49 }
  0xb2   :  { %v212_v16 = vpop.f32.mrf.mxu0 }
  0xb3   :  { %v213_v17 = vadd.f32 %v212_v16, %v119_v13  ;;  %v225_v18 = vpop.f32.mrf.mxu1 }
  0xb4   :  { %v226_v19 = vadd.f32 %v225_v18, %v120_v15 }
  0xb5   :  { %v229_v20 = vmax.f32 %v213_v17, 0.0 }
  0xb6   :  { %v230_v21 = vmax.f32 %v226_v19, 0.0 }
  0xb7   :  { %v231_v22 = vpack.c.bf16 %v229_v20, %v229_v20 }
  0xb8   :  { %v232_v23 = vpack.c.bf16 %v230_v21, %v230_v21 }
  0xb9   :  { %439 = vmatmul.bf16.vlgmr.msra.gmra.mxu2 %v231_v22  ;;  %465 = vmatmul.bf16.vlgmr.msrb.gmra.mxu0 %v231_v22 }
  0xba   :  { %452 = vmatmul.bf16.vlgmr.msra.gmra.mxu3 %v232_v23  ;;  %478 = vmatmul.bf16.vlgmr.msrb.gmra.mxu1 %v232_v23  ;;  %v214_v24 = vpop.f32.mrf.mxu0 }
  0xbb   :  { %v227_v25 = vpop.f32.mrf.mxu1  ;;  %886 = vmatpush.bf16.msra.mxu3 %v1407_v62  ;;  %873 = vmatpush.bf16.msra.mxu2 %v1399_v63  ;;  %v1403_v24 = vld [vmem:[#allocation7 + $0x58] sm:$0xff]  ;;  %v914_v62 = vld [vmem:[%s1630_s9] sm:$0x3] }
  0xbc   :  { %v1396_v25 = vld [vmem:[#allocation7 + $0x20] sm:$0xff]  ;;  %vm915_vm0 = vnez %v914_v62 }
  0xbf   :  { %887 = vmatpush.bf16.msra.mxu3 %v1406_v0  ;;  %874 = vmatpush.bf16.msra.mxu2 %v1398_v1 }
  0xc3   :  { %888 = vmatpush.bf16.msra.mxu3 %v1405_v2  ;;  %875 = vmatpush.bf16.msra.mxu2 %v1397_v3  ;;  %v1532_v2 = vmov 0  }
  0xc4   :  { %v916_v3 = vsel %vm915_vm0, 16843009, %v1532_v2 }
  0xc7   :  { %889 = vmatpush.bf16.msra.mxu3 %v1404_v4  ;;  %876 = vmatpush.bf16.msra.mxu2 %v1396_v25 }
  0xcb   :  { %890 = vmatpush.bf16.msra.mxu3 %v1403_v24  ;;  %877 = vmatpush.bf16.msra.mxu2 %v1395_v27 }
  0xcf   :  { %891 = vmatpush.bf16.msra.mxu3 %v1402_v26  ;;  %878 = vmatpush.bf16.msra.mxu2 %v1394_v29 }
  0xd3   :  { %892 = vmatpush.bf16.msra.mxu3 %v1401_v28  ;;  %879 = vmatpush.bf16.msra.mxu2 %v1393_v31 }
  0xd7   :  { %893 = vmatpush.bf16.msra.mxu3 %v1400_v30  ;;  %880 = vmatpush.bf16.msra.mxu2 %v1392_v32 }
 0x136   :  { %v466_v7 = vpop.f32.mrf.mxu0 }
 0x137   :  { %v467_v8 = vadd.f32 %v466_v7, %v268_v6  ;;  %v479_v9 = vpop.f32.mrf.mxu1  ;;  %v917_v6 = vunpack.c.0.s8 %v916_v3 }
 0x139   :  { %v480_v10 = vadd.f32 %v479_v9, %v467_v8  ;;  %vm918_vm2 = vcmp.ne.s32.totalorder %v917_v6, 0 }
 0x13b   :  { %v484_v12 = vmax.f32 %v480_v10, 0.0 }
 0x13c   :  { %v440_v13 = vpop.f32.mrf.mxu2 }
 0x13d   :  { %v486_v14 = vpack.c.bf16 %v484_v12, %v484_v12  ;;  %v441_v15 = vadd.f32 %v440_v13, %v267_v11  ;;  %v453_v16 = vpop.f32.mrf.mxu3 }
 0x13e   :  { %v468_v17 = vpop.f32.mrf.mxu0 }
 0x13f   :  { %v454_v18 = vadd.f32 %v453_v16, %v441_v15  ;;  %v481_v19 = vpop.f32.mrf.mxu1  ;;  %706 = vmatmul.bf16.vlgmr.msrb.gmra.mxu3 %v486_v14  ;;  %732 = vmatmul.bf16.vlgmr.msra.gmra.mxu1 %v486_v14 }
 0x141   :  { %v483_v20 = vmax.f32 %v454_v18, 0.0 }
 0x143   :  { %v485_v21 = vpack.c.bf16 %v483_v20, %v483_v20 }
 0x144   :  { %v442_v22 = vpop.f32.mrf.mxu2 }
 0x145   :  { %v455_v23 = vpop.f32.mrf.mxu3  ;;  %693 = vmatmul.bf16.vlgmr.msrb.gmra.mxu2 %v485_v21  ;;  %719 = vmatmul.bf16.vlgmr.msra.gmra.mxu0 %v485_v21 }
 0x1bc   :  { %v733_v33 = vpop.f32.mrf.mxu1 }
 0x1c2   :  { %v707_v36 = vpop.f32.mrf.mxu3  ;;  %v720_v37 = vpop.f32.mrf.mxu0 }
 0x1c3   :  { %v721_v38 = vadd.f32 %v720_v37, %v522_v35 }
 0x1c4   :  { %v735_v39 = vpop.f32.mrf.mxu1 }
 0x1c5   :  { %v734_v40 = vadd.f32 %v733_v33, %v721_v38 }
 0x1c7   :  { %v738_v42 = vmax.f32 %v734_v40, 0.0 }
 0x1c8   :  { %v694_v43 = vpop.f32.mrf.mxu2 }
 0x1c9   :  { %v740_v44 = vpack.c.bf16 %v738_v42, %v738_v42  ;;  %v695_v45 = vadd.f32 %v694_v43, %v521_v41 }
 0x1ca   :  { %v709_v46 = vpop.f32.mrf.mxu3  ;;  %v722_v47 = vpop.f32.mrf.mxu0 }
 0x1cb   :  { %v708_v48 = vadd.f32 %v707_v36, %v695_v45  ;;  %894 = vmatmul.bf16.vlgmr.msra.gmra.mxu3 %v740_v44 }
 0x1cd   :  { %v737_v49 = vmax.f32 %v708_v48, 0.0 }
 0x1cf   :  { %v739_v50 = vpack.c.bf16 %v737_v49, %v737_v49 }
 0x1d0   :  { %v696_v51 = vpop.f32.mrf.mxu2 }
 0x1d1   :  { %881 = vmatmul.bf16.vlgmr.msra.gmra.mxu2 %v739_v50 }
 0x24e   :  { %v895_v52 = vpop.f32.mrf.mxu3 }
 0x254   :  { %v882_v54 = vpop.f32.mrf.mxu2 }
 0x255   :  { %v883_v55 = vadd.f32 %v1417_v53, %v882_v54 }
 0x256   :  { %v897_v56 = vpop.f32.mrf.mxu3 }
 0x257   :  { %v896_v57 = vadd.f32 %v895_v52, %v883_v55 }
 0x259   :  { %v900_v58 = vand.u32 2147483647, %v896_v57  ;;  %v899_v10 = vmax.f32 %v896_v57, 0.0 }
 0x25b   :  { %v901_v59 = vsub.f32 0.0, %v900_v58 }
 0x25c   :  { %v884_v60 = vpop.f32.mrf.mxu2 }
 0x25d   :  { %v902_v61 = vmul.f32 1.442695, %v901_v59 }
 0x25f   :  { %1418 = vpow2.f32 %v902_v61 }
 0x265   :  { %v1419_v63 = vpop.eup %1418 }
 0x266   :  { %v904_v0 = vadd.f32 1.0, %v1419_v63  ;;  %v907_v1 = vmul.f32 -0.5, %v1419_v63  ;;  %v910_v5 = vand.u32 2147483647, %v1419_v63 }
 0x268   :  { %1420 = vlog2.f32 %v904_v0  ;;  %v908_v4 = vadd.f32 1.0, %v907_v1  ;;  %vm911_vm1 = vcmp.lt.f32.partialorder %v910_v5, 0.0004427343 }
 0x26a   :  { %v909_v9 = vmul.f32 %v1419_v63, %v908_v4 }
 0x26e   :  { %v1421_v7 = vpop.eup %1420 }
 0x26f   :  { %v906_v8 = vmul.f32 0.6931472, %v1421_v7 }
 0x271   :  { %v912_v11 = vsel %vm911_vm1, %v909_v9, %v906_v8 }
 0x272   :  { %v913_v12 = vadd.f32 %v912_v11, %v899_v10 }
 0x274   :  { %v919_v13 = vsel %vm918_vm2, %v913_v12, 0.0 }
 0x275   :  { %920 = vst [vmem:[%s1631_s10] sm:$0xff] %v919_v13 }
 0x276   :  { %925 = vsyncpa [#allocation3], 1 }
 0x277   :  { %926 = vsyncpa [#allocation5], 1 }
 0x278   :  { %927 = vsyncpa [#allocation8], 1 }

</bundles_post_ra>
